<compile_context>
chip_gen: v6e
topology: v6e:2x2x1
jax: 0.10.0
libtpu: 0.0.40
codegen_flags: <defaults>
</compile_context>

<pallas_src>
import functools

import jax
import jax.numpy as jnp
from jax.experimental import pallas as pl
from jax.experimental.pallas import tpu as pltpu


# ---------------------------------------------------------------------------
# Kernels
# ---------------------------------------------------------------------------

def _add_norm_kernel(x_ref, sub_ref, o_ref):
    """Single-pass path: each block holds `bt` complete flattened rows."""
    y = x_ref[...].astype(jnp.float32) + sub_ref[...].astype(jnp.float32)
    inv_n = jnp.float32(1.0 / y.shape[-1])
    mean = jnp.sum(y, axis=-1, keepdims=True) * inv_n
    d = y - mean                                        # centered -> PyTorch-grade numerics
    var = jnp.sum(d * d, axis=-1, keepdims=True) * inv_n
    inv = jax.lax.rsqrt(var + 1e-5)                     # EUP slot, effectively free
    # Fresh-init LayerNorm affine (weight=1, bias=0) is an identity -> elided.
    o_ref[...] = (d * inv).astype(o_ref.dtype)


def _stats_kernel(x_ref, sub_ref, mean_ref, inv_ref, s1_ref, s2_ref, *, n_total, tk):
    """Reduction-tiled path, pass 1: accumulate per-row sum / sumsq over N tiles."""
    k = pl.program_id(1)

    @pl.when(k == 0)
    def _():
        s1_ref[...] = jnp.zeros_like(s1_ref)
        s2_ref[...] = jnp.zeros_like(s2_ref)

    y = x_ref[...].astype(jnp.float32) + sub_ref[...].astype(jnp.float32)
    col = jax.lax.broadcasted_iota(jnp.int32, y.shape, 1) + k * tk
    y = jnp.where(col < n_total, y, 0.0)                # mask ragged tail of the row
    s1_ref[...] += jnp.sum(y, axis=-1, keepdims=True)
    s2_ref[...] += jnp.sum(y * y, axis=-1, keepdims=True)

    @pl.when(k == pl.num_programs(1) - 1)
    def _():
        inv_n = jnp.float32(1.0 / n_total)
        mean = s1_ref[...] * inv_n
        # One-pass (uncentered) variance is unavoidable when a row spans several
        # blocks; clamp for fused-form rounding.
        # TODO(synk): Welford-style merge if cancellation ever matters for huge N.
        var = jnp.maximum(s2_ref[...] * inv_n - mean * mean, 0.0)
        mean_ref[...] = mean
        inv_ref[...] = jax.lax.rsqrt(var + 1e-5)


def _normalize_kernel(x_ref, sub_ref, mean_ref, inv_ref, o_ref):
    """Reduction-tiled path, pass 2: normalize each (bt, tk) tile."""
    y = x_ref[...].astype(jnp.float32) + sub_ref[...].astype(jnp.float32)
    o_ref[...] = ((y - mean_ref[...]) * inv_ref[...]).astype(o_ref.dtype)


# ---------------------------------------------------------------------------
# Tiling / VMEM budgeting
# ---------------------------------------------------------------------------

def _sublane_quantum(itemsize):
    # f32 -> 8 rows, bf16 -> 16, int8/fp8 -> 32 (sub-32-bit dtypes pack along sublanes).
    return 8 * max(1, 4 // itemsize)


def _block_equivalents(itemsize):
    # 3 arrays (x, sub, out) double-buffered by the pipeline = 6 block copies, plus
    # the in-kernel f32 working set (y, centered/normalized temps) ~ 4 f32 blocks
    # (counted relative to the input block width, so bf16 inputs pay 2x per temp).
    return 6 + 4 * max(1, 4 // itemsize)


def _vmem_budget():
    """(vmem_limit_bytes, block_budget_bytes), generation-aware."""
    cap = 64 * 1024 * 1024                       # conservative fallback (= v7x per-core VMEM)
    try:
        cap = pltpu.get_tpu_info().vmem_capacity_bytes
    except Exception:
        pass
    vmem_limit = min(cap // 2, 96 * 1024 * 1024)  # v7x: 32 MiB, v5e/v6e: 64 MiB
    block_budget = (vmem_limit * 4) // 5          # ~20% headroom for misc scratch
    return vmem_limit, block_budget


def _pick_batch_tile(B, N, itemsize, block_budget, equiv):
    """Rows per block for the single-pass path; None -> fall back to N-tiled path."""
    sub_q = _sublane_quantum(itemsize)
    row_bytes = max(1, N * itemsize)
    max_rows = block_budget // (equiv * row_bytes)
    if max_rows < min(B, sub_q):
        return None                               # even a minimal tile blows VMEM -> tile N
    if B <= sub_q:
        return B                                  # tiny batch: one full-B block
    max_rows = max(sub_q, (max_rows // sub_q) * sub_q)
    # Target ~4 grid steps when B allows: v7x's two TensorCores each get >=2 blocks
    # (pipelining slack + load balance); per-step overhead (~0.35 us) is negligible
    # once blocks are >= ~1 MiB, which the budget-derived cap guarantees here.
    bt_target = ((pl.cdiv(B, 4) + sub_q - 1) // sub_q) * sub_q
    return min(max_rows, max(sub_q, bt_target))


def _pick_n_tiles(B, N, itemsize, block_budget, equiv):
    """(bt, tk) for the reduction-tiled path (rows too large for one block)."""
    sub_q = _sublane_quantum(itemsize)
    bt = B if B < sub_q else sub_q
    per_lane = max(1, equiv * bt * itemsize)
    tk = max(128, (block_budget // per_lane // 128) * 128)
    tk = min(tk, max(128, ((N + 127) // 128) * 128))
    return bt, tk


# ---------------------------------------------------------------------------
# pallas_call wrappers
# ---------------------------------------------------------------------------

def _add_norm_single(x2, s2, bt, vmem_limit, donate_x):
    B, N = x2.shape
    return pl.pallas_call(
        _add_norm_kernel,
        out_shape=jax.ShapeDtypeStruct((B, N), x2.dtype),
        grid_spec=pltpu.PrefetchScalarGridSpec(
            num_scalar_prefetch=0,
            grid=(pl.cdiv(B, bt),),
            in_specs=[
                pl.BlockSpec((bt, N), lambda i: (i, 0)),   # x
                pl.BlockSpec((bt, N), lambda i: (i, 0)),   # sub_layer(x)
            ],
            out_specs=pl.BlockSpec((bt, N), lambda i: (i, 0)),
        ),
        compiler_params=pltpu.CompilerParams(
            dimension_semantics=("parallel",),
            vmem_limit_bytes=vmem_limit,
        ),
        input_output_aliases={0: 0} if donate_x else {},
    )(x2, s2)


def _add_norm_n_tiled(x2, s2, bt, tk, vmem_limit):
    """Fallback for rows too big for one block: stats pass + normalize pass."""
    B, N = x2.shape
    nb = pl.cdiv(B, bt)
    nk = pl.cdiv(N, tk)

    mean, inv = pl.pallas_call(
        functools.partial(_stats_kernel, n_total=N, tk=tk),
        out_shape=(jax.ShapeDtypeStruct((B, 1), jnp.float32),
                   jax.ShapeDtypeStruct((B, 1), jnp.float32)),
        grid_spec=pltpu.PrefetchScalarGridSpec(
            num_scalar_prefetch=0,
            grid=(nb, nk),
            in_specs=[
                pl.BlockSpec((bt, tk), lambda i, k: (i, k)),
                pl.BlockSpec((bt, tk), lambda i, k: (i, k)),
            ],
            out_specs=[
                pl.BlockSpec((bt, 1), lambda i, k: (i, 0)),
                pl.BlockSpec((bt, 1), lambda i, k: (i, 0)),
            ],
            scratch_shapes=[
                pltpu.VMEM((bt, 1), jnp.float32),   # partial sum
                pltpu.VMEM((bt, 1), jnp.float32),   # partial sumsq
            ],
        ),
        compiler_params=pltpu.CompilerParams(
            dimension_semantics=("parallel", "arbitrary"),
            vmem_limit_bytes=vmem_limit,
        ),
    )(x2, s2)

    return pl.pallas_call(
        _normalize_kernel,
        out_shape=jax.ShapeDtypeStruct((B, N), x2.dtype),
        grid_spec=pltpu.PrefetchScalarGridSpec(
            num_scalar_prefetch=0,
            grid=(nb, nk),
            in_specs=[
                pl.BlockSpec((bt, tk), lambda i, k: (i, k)),
                pl.BlockSpec((bt, tk), lambda i, k: (i, k)),
                pl.BlockSpec((bt, 1), lambda i, k: (i, 0)),
                pl.BlockSpec((bt, 1), lambda i, k: (i, 0)),
            ],
            out_specs=pl.BlockSpec((bt, tk), lambda i, k: (i, k)),
        ),
        compiler_params=pltpu.CompilerParams(
            dimension_semantics=("parallel", "parallel"),
            vmem_limit_bytes=vmem_limit,
        ),
    )(x2, s2, mean, inv)


def add_norm(x, sub_output, *, donate_x=False):
    """x, sub_output: [B, ...]; LayerNorm over all non-batch dims (fresh-init affine)."""
    B = x.shape[0]
    N = 1
    for d in x.shape[1:]:
        N *= d

    x2 = x.reshape(B, N)                          # lane-dense: all non-batch dims on lanes
    s2 = sub_output.reshape(B, N)

    itemsize = x.dtype.itemsize
    vmem_limit, block_budget = _vmem_budget()
    equiv = _block_equivalents(itemsize)

    bt = _pick_batch_tile(B, N, itemsize, block_budget, equiv)
    if bt is not None:
        out = _add_norm_single(x2, s2, bt, vmem_limit, donate_x)
    else:
        bt, tk = _pick_n_tiles(B, N, itemsize, block_budget, equiv)
        out = _add_norm_n_tiled(x2, s2, bt, tk, vmem_limit)
    return out.reshape(x.shape)


def feed_forward_sublayer(x, w, b):
    """Deterministic stand-in for `sub_layer` (a simple linear feed-forward)."""
    return jnp.einsum("bsh,hk->bsk", x, w) + b


if __name__ == "__main__":
    B, S, H = 2, 8, 32
    key = jax.random.PRNGKey(0)
    kx, kw, kb = jax.random.split(key, 3)

    x = jax.random.normal(kx, (B, S, H), dtype=jnp.float32)

    # Deterministic sub_layer (feed-forward) parameters.
    w_ff = jax.random.normal(kw, (H, H), dtype=jnp.float32) * 0.05
    b_ff = jax.random.normal(kb, (H,), dtype=jnp.float32) * 0.05

    sub_output = feed_forward_sublayer(x, w_ff, b_ff)
    out = jax.block_until_ready(add_norm(x, sub_output))

    # Reference in plain JAX (fresh-init LayerNorm: weight=1, bias=0; eval-mode dropout).
    y = x + sub_output
    mean = jnp.mean(y, axis=(1, 2), keepdims=True)
    var = jnp.mean(jnp.square(y - mean), axis=(1, 2), keepdims=True)
    ref = (y - mean) / jnp.sqrt(var + 1e-5)

    assert out.shape == (B, S, H)
    assert jnp.allclose(out, ref, atol=1e-4, rtol=1e-4)

    # Also exercise the reduction-tiled (large-N fallback) path at small shapes.
    N = S * H
    out_nt = jax.block_until_ready(
        _add_norm_n_tiled(x.reshape(B, N), sub_output.reshape(B, N),
                          bt=B, tk=128, vmem_limit=32 * 1024 * 1024)
    ).reshape(B, S, H)
    assert jnp.allclose(out_nt, ref, atol=1e-4, rtol=1e-4)

    print("KERNEL_OK")
</pallas_src>

<mosaic_0001>
module attributes {stable_mosaic.version = 11 : i64} {
  func.func @_add_norm_kernel(%arg0: i32, %arg1: memref<2x256xf32, #tpu.memory_space<vmem>>, %arg2: memref<2x256xf32, #tpu.memory_space<vmem>>, %arg3: memref<2x256xf32, #tpu.memory_space<vmem>>) attributes {dimension_semantics = [#tpu.dimension_semantics<parallel>], iteration_bounds = array<i64: 1>, scalar_prefetch = 0 : i64, scratch_operands = 0 : i64, tpu.core_type = #tpu.core_type<tc>, window_params = [{transform_indices = @transform_0, window_bounds = array<i64: 2, 256>}, {transform_indices = @transform_1, window_bounds = array<i64: 2, 256>}, {transform_indices = @transform_2, window_bounds = array<i64: 2, 256>}]} {
    %c0 = arith.constant 0 : index
    %c0_0 = arith.constant 0 : index
    %0 = vector.load %arg1[%c0, %c0_0] : memref<2x256xf32, #tpu.memory_space<vmem>>, vector<2x256xf32>
    %c0_1 = arith.constant 0 : index
    %c0_2 = arith.constant 0 : index
    %1 = vector.load %arg2[%c0_1, %c0_2] : memref<2x256xf32, #tpu.memory_space<vmem>>, vector<2x256xf32>
    %2 = arith.addf %0, %1 : vector<2x256xf32>
    %cst = arith.constant dense<0.000000e+00> : vector<2xf32>
    %3 = vector.multi_reduction <add>, %2, %cst [1] : vector<2x256xf32> to vector<2xf32>
    %4 = vector.shape_cast %3 : vector<2xf32> to vector<2x1xf32>
    %cst_3 = arith.constant 3.906250e-03 : f32
    %5 = vector.broadcast %cst_3 : f32 to vector<2x1xf32>
    %6 = arith.mulf %4, %5 : vector<2x1xf32>
    %7 = vector.broadcast %6 : vector<2x1xf32> to vector<2x256xf32>
    %8 = arith.subf %2, %7 : vector<2x256xf32>
    %9 = arith.mulf %8, %8 : vector<2x256xf32>
    %cst_4 = arith.constant dense<0.000000e+00> : vector<2xf32>
    %10 = vector.multi_reduction <add>, %9, %cst_4 [1] : vector<2x256xf32> to vector<2xf32>
    %11 = vector.shape_cast %10 : vector<2xf32> to vector<2x1xf32>
    %cst_5 = arith.constant 3.906250e-03 : f32
    %12 = vector.broadcast %cst_5 : f32 to vector<2x1xf32>
    %13 = arith.mulf %11, %12 : vector<2x1xf32>
    %cst_6 = arith.constant 9.99999974E-6 : f32
    %14 = vector.broadcast %cst_6 : f32 to vector<2x1xf32>
    %15 = arith.addf %13, %14 : vector<2x1xf32>
    %16 = math.rsqrt %15 : vector<2x1xf32>
    %17 = vector.broadcast %16 : vector<2x1xf32> to vector<2x256xf32>
    %18 = arith.mulf %8, %17 : vector<2x256xf32>
    %c0_7 = arith.constant 0 : index
    %c0_8 = arith.constant 0 : index
    %19 = vector.load %arg3[%c0_7, %c0_8] : memref<2x256xf32, #tpu.memory_space<vmem>>, vector<2x256xf32>
    tpu.vector_store %arg3[%c0_7, %c0_8], %18 {strides = array<i32>} : memref<2x256xf32, #tpu.memory_space<vmem>>, vector<2x256xf32>,
    return
  }
  func.func @transform_0(%arg0: i32) -> (i32, i32) {
    %c0_i32 = arith.constant 0 : i32
    %c0_i32_0 = arith.constant 0 : i32
    return %arg0, %c0_i32 : i32, i32
  }
  func.func @transform_1(%arg0: i32) -> (i32, i32) {
    %c0_i32 = arith.constant 0 : i32
    %c0_i32_0 = arith.constant 0 : i32
    return %arg0, %c0_i32 : i32, i32
  }
  func.func @transform_2(%arg0: i32) -> (i32, i32) {
    %c0_i32 = arith.constant 0 : i32
    %c0_i32_0 = arith.constant 0 : i32
    return %arg0, %c0_i32 : i32, i32
  }
}

</mosaic_0001>

<bundles_post_ra>
// kernel: tpu_custom_call.1
= control target key start
LH: loop header
LB: loop body
LE: loop exit
PB: predicated region body
PF: predicated region fallthrough
CT: control target
= control target key end

     0   :  { %7 = vsyncpa [#allocation3], 0  ;;  %s220_s0 = inlined_call_operand.hbm [shape: f32[2,256], index: 0, kind: input, shape index: {}]   ;;  %s221_s1 = inlined_call_operand.hbm [shape: f32[2,256], index: 1, kind: input, shape index: {}]   ;;  %s222_s2 = inlined_call_operand.hbm [shape: f32[2,256], index: 2, kind: output, shape index: {}]  }
   0x1   :  { %8 = vsyncpa [#allocation6], 0 }
   0x2   :  { %9 = vsyncpa [#allocation4], 0  ;;  %s187_s9 = smov [#allocation2]   ;;  %s188_s11 = smov [#allocation5]  }
   0x3   :  { %s16_s10 = sshll.u32 %s187_s9, 4  ;;  %s26_s12 = sshll.u32 %s188_s11, 4  ;;  %s17_s10 = int_to_ptr.vmem [resolvable:$true] %s16_s10  ;;  %s27_s12 = int_to_ptr.vmem [resolvable:$true] %s26_s12 }
   0x4   :  { %s129_s13 = scalar_lea.vmem %s17_s10, 64  ;;  %p134_p1 = scmp.lt.s32.totalorder %s17_s10, %s17_s10 }
   0x5   :  { %p130_p0 = scmp.ne.s32.totalorder %s17_s10, %s129_s13  ;;  %p135_p2 = scmp.lt.s32.totalorder %s129_s13, %s129_s13 }
   0x7   :  { %p136_p3 = por %p135_p2, %p134_p1 }
   0x9   :  { %p137_p4 = pnand %p136_p3, %p130_p0 }
   0xb   :  { %140 = shalt.err (!%p137_p4)
}
   0xc   :  { %19 = dma.hbm_to_vmem [thread:$0]  %s220_s0, 64, %s17_s10, [#allocation3]  }
   0xd   :  { %s149_s16 = scalar_lea.vmem %s27_s12, 64  ;;  %p154_p6 = scmp.lt.s32.totalorder %s27_s12, %s27_s12 }
   0xe   :  { %p150_p5 = scmp.ne.s32.totalorder %s27_s12, %s149_s16  ;;  %p155_p7 = scmp.lt.s32.totalorder %s149_s16, %s149_s16 }
  0x10   :  { %p156_p8 = por %p155_p7, %p154_p6 }
  0x12   :  { %p157_p9 = pnand %p156_p8, %p150_p5 }
  0x14   :  { %160 = shalt.err (!%p157_p9)
}
  0x15   :  { %29 = dma.hbm_to_vmem [thread:$0]  %s221_s1, 64, %s27_s12, [#allocation6]  }
  0x16   :  { %181 = dma.done.wait [#allocation3], 64  }
  0x17   :  { %182 = vsyncadd [#allocation3], 4294967232 }
  0x18   :  { %183 = dma.done.wait [#allocation6], 64  }
  0x19   :  { %184 = vsyncadd [#allocation6], 4294967232  ;;  %v43_v0 = vlaneseq  ;;  %v189_v1 = vmov 1983009808   ;;  %v36_v6 = vld [vmem:[#allocation2] sm:$0xf] }
  0x1a   :  { %v41_v2 = vunpack.c.l.s4 %v189_v1  ;;  %v37_v7 = vld [vmem:[#allocation5] sm:$0xf]  ;;  %vm50_vm0 = vcmask 1041408   ;;  %v190_v14 = vmov 269488144   ;;  %s191_s0 = smov [#allocation7]  }
  0x1b   :  { %v44_v3 = vshrl.u32 %v43_v0, 7  ;;  %v38_v8 = vadd.f32 %v37_v7, %v36_v6  ;;  %v59_v15 = vunpack.c.l.s4 %v190_v14  ;;  %s104_s1 = sshll.u32 %s191_s0, 4  ;;  %s105_s1 = int_to_ptr.vmem [resolvable:$true] %s104_s1 }
  0x1c   :  { %v42_v4 = vunpack.c.0.s8 %v41_v2  ;;  %s161_s19 = scalar_lea.vmem %s105_s1, 64  ;;  %p166_p11 = scmp.lt.s32.totalorder %s105_s1, %s105_s1 }
  0x1d   :  { %v60_v16 = vunpack.c.0.s8 %v59_v15  ;;  %p162_p10 = scmp.ne.s32.totalorder %s105_s1, %s161_s19  ;;  %p167_p12 = scmp.lt.s32.totalorder %s161_s19, %s161_s19 }
  0x1e   :  { %v45_v5 = vsub.s32 %v42_v4, %v44_v3 }
  0x1f   :  { %v63_v17 = vsub.s32 %v60_v16, %v44_v3  ;;  %p168_p13 = por %p167_p12, %p166_p11 }
  0x20   :  { %v46_v9 = vrot.slane %v38_v8, %v45_v5 }
  0x21   :  { %p169_p0 = pnand %p168_p13, %p162_p10 }
  0x22   :  { %v47_v10 = vcombine.high %v46_v9, %v46_v9  ;;  %v51_v11 = vsel %vm50_vm0, %v46_v9, 0.0 }
  0x24   :  { %v52_v12 = vsel %vm50_vm0, %v47_v10, 0.0 }
  0x25   :  { %v53_v13 = vadd.f32 %v52_v12, %v51_v11 }
  0x27   :  { %54 = vadd.xlane.f32.xlu0 %v53_v13 }
  0xb0   :  { %v55_v18 = vpop.xlane.xlu0 %54 }
  0xb1   :  { %v56_v19 = vmul.f32 0.00390625, %v55_v18 }
  0xb3   :  { %v64_v20 = vrot.slane %v56_v19, %v63_v17 }
  0xb5   :  { %v66_v21 = vsub.f32 %v38_v8, %v64_v20 }
  0xb7   :  { %v67_v22 = vmul.f32 %v66_v21, %v66_v21 }
  0xb9   :  { %v75_v23 = vrot.slane %v67_v22, %v45_v5 }
  0xbb   :  { %v76_v24 = vcombine.high %v75_v23, %v75_v23  ;;  %v79_v25 = vsel %vm50_vm0, %v75_v23, 0.0 }
  0xbd   :  { %v80_v26 = vsel %vm50_vm0, %v76_v24, 0.0 }
  0xbe   :  { %v81_v27 = vadd.f32 %v80_v26, %v79_v25 }
  0xc0   :  { %82 = vadd.xlane.f32.xlu0 %v81_v27 }
 0x149   :  { %v83_v28 = vpop.xlane.xlu0 %82 }
 0x14a   :  { %v84_v29 = vmul.f32 0.00390625, %v83_v28 }
 0x14c   :  { %v85_v30 = vadd.f32 1e-05, %v84_v29 }
 0x14e   :  { %119 = vrsqrt.f32 %v85_v30 }
 0x15b   :  { %v120_v31 = vpop.eup %119 }
 0x15c   :  { %v94_v32 = vrot.slane %v120_v31, %v63_v17 }
 0x15e   :  { %v96_v33 = vmul.f32 %v94_v32, %v66_v21 }
 0x160   :  { %97 = vst [vmem:[#allocation7] sm:$0xf] %v96_v33 }
 0x161   :  { %172 = shalt.err (!%p169_p0)
}
 0x162   :  { %107 = dma.vmem_to_hbm [thread:$0]  %s105_s1, 64, %s222_s2, [#allocation4]  }
 0x163   :  { %185 = dma.done.wait [#allocation4], 64  }
 0x164   :  { %186 = vsyncadd [#allocation4], 4294967232 }
 0x165   :  { %111 = vsyncpa [#allocation3], 1 }
 0x166   :  { %112 = vsyncpa [#allocation6], 1 }
 0x167   :  { %113 = vsyncpa [#allocation4], 1 }

</bundles_post_ra>
